<compile_context>
chip_gen: v7x
topology: tpu7x:2x2x1
jax: 0.10.0
libtpu: 0.0.40
codegen_flags: <defaults>
</compile_context>

<pallas_src>
import functools

import jax
import jax.numpy as jnp
from jax.experimental import pallas as pl
from jax.experimental.pallas import tpu as pltpu


def _as_i32(v: int) -> int:
    """Reinterpret a 32-bit unsigned constant as a signed Python int (fits int32)."""
    v &= 0xFFFFFFFF
    return v - (1 << 32) if v >= (1 << 31) else v


_MIX_A = _as_i32(0x7FEB352D)
_MIX_B = _as_i32(0x846CA68B)
_GOLDEN = _as_i32(0x9E3779B9)


def _mix32(v):
    """splitmix32-style finalizer on int32 (logical shifts via arith shift + mask)."""
    v = v ^ ((v >> 16) & 0xFFFF)
    v = v * _MIX_A
    v = v ^ ((v >> 15) & 0x1FFFF)
    v = v * _MIX_B
    v = v ^ ((v >> 16) & 0xFFFF)
    return v


def _locked_dropout_kernel(seed_ref, x_ref, o_ref, *,
                           keep_prob: float, block_rows: int, ncols: int):
    # P(keep) = threshold / 2^31 (compare on the low 31 hash bits).
    threshold = min(int(round(keep_prob * (1 << 31))), (1 << 31) - 1)
    inv_keep = jnp.float32(1.0 / keep_prob)

    shape = x_ref.shape                                   # (block_rows, ncols)
    row = jax.lax.broadcasted_iota(jnp.int32, shape, 0)
    col = jax.lax.broadcasted_iota(jnp.int32, shape, 1)
    row0 = pl.program_id(0) * block_rows
    idx = (row0 + row) * ncols + col                      # global flattened index

    key = _mix32(seed_ref[0] ^ _GOLDEN)                   # scalar, per-seed stream
    h = _mix32(idx ^ key)
    keep = (h & 0x7FFFFFFF) < threshold                   # Bernoulli(keep_prob)

    scale = jnp.where(keep, inv_keep, jnp.float32(0.0)).astype(o_ref.dtype)
    o_ref[...] = x_ref[...] * scale


def _lane_dense_view(n: int, last_dim: int):
    """Factor n into (rows, cols) with cols a multiple of 128 when possible."""
    for c in (2048, 1024, 512, 256, 128):
        if n % c == 0:
            return n // c, c
    return n // last_dim, last_dim        # fallback: cols == full last dim (allowed)


def locked_dropout(x, *, seed: int, dropout: float = 0.5, train: bool = True):
    """Pallas LockedDropout forward.  Same seed -> same ("locked") mask."""
    if not train or dropout <= 0.0:
        return x
    if dropout >= 1.0:
        return jnp.zeros_like(x)

    keep_prob = 1.0 - float(dropout)
    orig_shape = x.shape
    n = x.size
    nrows, ncols = _lane_dense_view(n, orig_shape[-1])
    x2 = x.reshape(nrows, ncols)

    # ~2 MiB blocks; in+out double-buffered => ~8 MiB live VMEM on every gen.
    target_block_bytes = 2 * 1024 * 1024
    block_rows = max(1, target_block_bytes // (ncols * x.dtype.itemsize))
    block_rows = min(block_rows, nrows)
    if nrows >= 8:
        block_rows = max(8, (block_rows // 8) * 8)        # sublane-aligned tiles

    grid = (pl.cdiv(nrows, block_rows),)

    compiler_params = None
    if jax.default_backend() == "tpu":
        # Shard row tiles across both TensorCores on v7x; harmless on v5e/v6e.
        compiler_params = pltpu.CompilerParams(dimension_semantics=("parallel",))

    seed_arr = jnp.asarray([seed], dtype=jnp.int32)
    kernel = functools.partial(_locked_dropout_kernel, keep_prob=keep_prob,
                               block_rows=block_rows, ncols=ncols)

    out2 = pl.pallas_call(
        kernel,
        out_shape=jax.ShapeDtypeStruct((nrows, ncols), x.dtype),
        grid=grid,
        in_specs=[
            pl.BlockSpec(memory_space=pltpu.SMEM),                # seed scalar
            pl.BlockSpec((block_rows, ncols), lambda i: (i, 0)),  # x row tile
        ],
        out_specs=pl.BlockSpec((block_rows, ncols), lambda i: (i, 0)),
        compiler_params=compiler_params,
    )(seed_arr, x2)
    return out2.reshape(orig_shape)


if __name__ == "__main__":
    key = jax.random.PRNGKey(0)
    seq, batch, hidden = 8, 2, 32
    x = jax.random.normal(key, (seq, batch, hidden), dtype=jnp.float32)

    dropout = 0.5
    out = jax.block_until_ready(locked_dropout(x, seed=0, dropout=dropout, train=True))

    # Every output element is either 0 or x / (1 - dropout).
    keep = 1.0 - dropout
    is_zero = jnp.isclose(out, 0.0, atol=1e-6)
    is_scaled = jnp.isclose(out, x / keep, rtol=1e-5, atol=1e-6)
    assert bool(jnp.all(is_zero | is_scaled)), "mask semantics violated"

    # Same seed -> same ("locked") mask; different seed -> different mask.
    out_again = jax.block_until_ready(locked_dropout(x, seed=0, dropout=dropout, train=True))
    assert bool(jnp.all(out == out_again)), "mask not reproducible for same seed"
    out_other = jax.block_until_ready(locked_dropout(x, seed=1, dropout=dropout, train=True))
    assert bool(jnp.any(out != out_other)), "different seeds should give different masks"

    # Keep fraction should be roughly keep_prob.
    frac_kept = float(jnp.mean((out != 0).astype(jnp.float32)))
    assert 0.2 < frac_kept < 0.8, f"implausible keep fraction {frac_kept}"

    # Eval mode and dropout=0 are the identity.
    eval_out = jax.block_until_ready(locked_dropout(x, seed=0, dropout=dropout, train=False))
    assert bool(jnp.all(eval_out == x)), "eval mode must be identity"
    nodrop = jax.block_until_ready(locked_dropout(x, seed=0, dropout=0.0, train=True))
    assert bool(jnp.all(nodrop == x)), "dropout=0 must be identity"

    print("KERNEL_OK")
</pallas_src>

<mosaic_0001>
module attributes {stable_mosaic.version = 11 : i64} {
  func.func @_locked_dropout_kernel(%arg0: i32, %arg1: memref<1xi32, #tpu.memory_space<smem>>, %arg2: memref<1x512xf32, #tpu.memory_space<vmem>>, %arg3: memref<1x512xf32, #tpu.memory_space<vmem>>) attributes {dimension_semantics = [#tpu.dimension_semantics<arbitrary>], iteration_bounds = array<i64: 1>, scalar_prefetch = 0 : i64, scratch_operands = 0 : i64, tpu.core_type = #tpu.core_type<tc>, window_params = [{transform_indices = @transform_0, window_bounds = array<i64: 1>}, {transform_indices = @transform_1, window_bounds = array<i64: 1, 512>}, {transform_indices = @transform_2, window_bounds = array<i64: 1, 512>}]} {
    %0 = tpu.iota {dimensions = array<i32: 0>} : vector<1x512xi32>
    %1 = tpu.iota {dimensions = array<i32: 1>} : vector<1x512xi32>
    %c1_i32 = arith.constant 1 : i32
    %2 = arith.muli %arg0, %c1_i32 : i32
    %3 = vector.broadcast %2 : i32 to vector<1x512xi32>
    %4 = arith.addi %3, %0 : vector<1x512xi32>
    %c512_i32 = arith.constant 512 : i32
    %5 = vector.broadcast %c512_i32 : i32 to vector<1x512xi32>
    %6 = arith.muli %4, %5 : vector<1x512xi32>
    %7 = arith.addi %6, %1 : vector<1x512xi32>
    %c0 = arith.constant 0 : index
    %8 = memref.load %arg1[%c0] : memref<1xi32, #tpu.memory_space<smem>>
    %c-1640531527_i32 = arith.constant -1640531527 : i32
    %9 = arith.xori %8, %c-1640531527_i32 : i32
    %c16_i32 = arith.constant 16 : i32
    %10 = arith.shrsi %9, %c16_i32 : i32
    %c65535_i32 = arith.constant 65535 : i32
    %11 = arith.andi %10, %c65535_i32 : i32
    %12 = arith.xori %9, %11 : i32
    %c2146121005_i32 = arith.constant 2146121005 : i32
    %13 = arith.muli %12, %c2146121005_i32 : i32
    %c15_i32 = arith.constant 15 : i32
    %14 = arith.shrsi %13, %c15_i32 : i32
    %c131071_i32 = arith.constant 131071 : i32
    %15 = arith.andi %14, %c131071_i32 : i32
    %16 = arith.xori %13, %15 : i32
    %c-2073254261_i32 = arith.constant -2073254261 : i32
    %17 = arith.muli %16, %c-2073254261_i32 : i32
    %c16_i32_0 = arith.constant 16 : i32
    %18 = arith.shrsi %17, %c16_i32_0 : i32
    %c65535_i32_1 = arith.constant 65535 : i32
    %19 = arith.andi %18, %c65535_i32_1 : i32
    %20 = arith.xori %17, %19 : i32
    %21 = vector.broadcast %20 : i32 to vector<1x512xi32>
    %22 = arith.xori %7, %21 : vector<1x512xi32>
    %c16_i32_2 = arith.constant 16 : i32
    %23 = vector.broadcast %c16_i32_2 : i32 to vector<1x512xi32>
    %24 = arith.shrsi %22, %23 : vector<1x512xi32>
    %c65535_i32_3 = arith.constant 65535 : i32
    %25 = vector.broadcast %c65535_i32_3 : i32 to vector<1x512xi32>
    %26 = arith.andi %24, %25 : vector<1x512xi32>
    %27 = arith.xori %22, %26 : vector<1x512xi32>
    %c2146121005_i32_4 = arith.constant 2146121005 : i32
    %28 = vector.broadcast %c2146121005_i32_4 : i32 to vector<1x512xi32>
    %29 = arith.muli %27, %28 : vector<1x512xi32>
    %c15_i32_5 = arith.constant 15 : i32
    %30 = vector.broadcast %c15_i32_5 : i32 to vector<1x512xi32>
    %31 = arith.shrsi %29, %30 : vector<1x512xi32>
    %c131071_i32_6 = arith.constant 131071 : i32
    %32 = vector.broadcast %c131071_i32_6 : i32 to vector<1x512xi32>
    %33 = arith.andi %31, %32 : vector<1x512xi32>
    %34 = arith.xori %29, %33 : vector<1x512xi32>
    %c-2073254261_i32_7 = arith.constant -2073254261 : i32
    %35 = vector.broadcast %c-2073254261_i32_7 : i32 to vector<1x512xi32>
    %36 = arith.muli %34, %35 : vector<1x512xi32>
    %c16_i32_8 = arith.constant 16 : i32
    %37 = vector.broadcast %c16_i32_8 : i32 to vector<1x512xi32>
    %38 = arith.shrsi %36, %37 : vector<1x512xi32>
    %c65535_i32_9 = arith.constant 65535 : i32
    %39 = vector.broadcast %c65535_i32_9 : i32 to vector<1x512xi32>
    %40 = arith.andi %38, %39 : vector<1x512xi32>
    %41 = arith.xori %36, %40 : vector<1x512xi32>
    %c2147483647_i32 = arith.constant 2147483647 : i32
    %42 = vector.broadcast %c2147483647_i32 : i32 to vector<1x512xi32>
    %43 = arith.andi %41, %42 : vector<1x512xi32>
    %c1073741824_i32 = arith.constant 1073741824 : i32
    %44 = vector.broadcast %c1073741824_i32 : i32 to vector<1x512xi32>
    %45 = arith.cmpi slt, %43, %44 : vector<1x512xi32>
    %cst = arith.constant 2.000000e+00 : f32
    %cst_10 = arith.constant 0.000000e+00 : f32
    %46 = vector.broadcast %cst : f32 to vector<1x512xf32>
    %47 = vector.broadcast %cst_10 : f32 to vector<1x512xf32>
    %48 = arith.select %45, %46, %47 : vector<1x512xi1>, vector<1x512xf32>
    %c0_11 = arith.constant 0 : index
    %c0_12 = arith.constant 0 : index
    %49 = vector.load %arg2[%c0_11, %c0_12] : memref<1x512xf32, #tpu.memory_space<vmem>>, vector<1x512xf32>
    %50 = arith.mulf %49, %48 : vector<1x512xf32>
    %c0_13 = arith.constant 0 : index
    %c0_14 = arith.constant 0 : index
    %51 = vector.load %arg3[%c0_13, %c0_14] : memref<1x512xf32, #tpu.memory_space<vmem>>, vector<1x512xf32>
    tpu.vector_store %arg3[%c0_13, %c0_14], %50 {strides = array<i32>} : memref<1x512xf32, #tpu.memory_space<vmem>>, vector<1x512xf32>,
    return
  }
  func.func @transform_0(%arg0: i32) -> i32 {
    %c0_i32 = arith.constant 0 : i32
    %c0_i32_0 = arith.constant 0 : i32
    return %c0_i32 : i32
  }
  func.func @transform_1(%arg0: i32) -> (i32, i32) {
    %c0_i32 = arith.constant 0 : i32
    %c0_i32_0 = arith.constant 0 : i32
    return %arg0, %c0_i32 : i32, i32
  }
  func.func @transform_2(%arg0: i32) -> (i32, i32) {
    %c0_i32 = arith.constant 0 : i32
    %c0_i32_0 = arith.constant 0 : i32
    return %arg0, %c0_i32 : i32, i32
  }
}

</mosaic_0001>

<bundles_post_ra>
// kernel: tpu_custom_call.1
= control target key start
LH: loop header
LB: loop body
LE: loop exit
PB: predicated region body
PF: predicated region fallthrough
CT: control target
= control target key end

     0   :  { %8 = vsyncpa [#allocation4], 0  ;;  %s281_s0 = inlined_call_operand.<no memory space> [shape: s32[1], index: 0, kind: input, shape index: {}]   ;;  %s282_s1 = inlined_call_operand.hbm [shape: f32[1,512], index: 1, kind: input, shape index: {}]   ;;  %s283_s2 = inlined_call_operand.hbm [shape: f32[1,512], index: 2, kind: output, shape index: {}]  }
   0x1   :  { %9 = vsyncpa [#allocation5], 0  ;;  %s228_s9 = smov [#allocation3]   ;;  %s180_s13 = scalar_lea.hbm %s282_s1, 64 }
   0x2   :  { %s18_s10 = sshll.u32 %s228_s9, 4  ;;  %p181_p0 = scmp.ne.s32.totalorder %s282_s1, %s180_s13  ;;  %s19_s10 = int_to_ptr.vmem [resolvable:$true] %s18_s10 }
   0x3   :  { %p184_p1 = scmp.lt.u32.totalorder %s180_s13, %s282_s1 }
   0x5   :  { %p186_p2 = pnand %p184_p1, %p181_p0 }
   0x7   :  { %189 = shalt.err (!%p186_p2)
}
   0x8   :  { %s190_s18 = scalar_lea.vmem %s19_s10, 64  ;;  %p195_p4 = scmp.lt.s32.totalorder %s19_s10, %s19_s10 }
   0x9   :  { %p191_p3 = scmp.ne.s32.totalorder %s19_s10, %s190_s18  ;;  %p196_p5 = scmp.lt.s32.totalorder %s190_s18, %s190_s18 }
   0xb   :  { %p197_p6 = por %p196_p5, %p195_p4 }
   0xd   :  { %p198_p7 = pnand %p197_p6, %p191_p3 }
   0xf   :  { %201 = shalt.err (!%p198_p7)
}
  0x10   :  { %21 = dma.hbm_to_vmem [thread:$0]  %s282_s1, 64, %s19_s10, [#allocation4]  }
  0x11   :  { %224 = dma.done.wait [#allocation4], 64  }
  0x12   :  { %225 = vsyncadd [#allocation4], 4294967232  ;;  %v25_v0 = vlaneseq  ;;  %s40_s23 = sxor.u32 2654435769, %s281_s0  ;;  %v229_v38 = vmov 1966171168  }
  0x13   :  { %s41_s24 = sshra.s32 %s40_s23, 16  ;;  %v121_v39 = vunpack.c.l.s4 %v229_v38  ;;  %v230_v56 = vmov 0.0   ;;  %s231_s5 = smov [#allocation6]  }
  0x14   :  { %s42_s25 = sand.u32 65535, %s41_s24  ;;  %v263_v1 = vshrl.u32 %v25_v0, 7  ;;  %v28_v2 = vand.u32 127, %v25_v0  ;;  %s155_s6 = sshll.u32 %s231_s5, 4  ;;  %vm146_vm4 = vcmp.lt.s32.totalorder %v25_v0, 512  ;;  %s156_s6 = int_to_ptr.vmem [resolvable:$true] %s155_s6 }
  0x15   :  { %s43_s26 = sxor.u32 %s42_s25, %s40_s23  ;;  %v122_v48 = vunpack.c.0.s8 %v121_v39  ;;  %s202_s7 = scalar_lea.vmem %s156_s6, 64 }
  0x16   :  { %s44_s27 = smul.u32 2146121005, %s43_s26  ;;  %v29_v3 = vadd.s32 128, %v28_v2  ;;  %v30_v4 = vadd.s32 256, %v28_v2  ;;  %v31_v5 = vadd.s32 384, %v28_v2  ;;  %v34_v6 = vmul.u32 512, %v263_v1  ;;  %p203_p8 = scmp.ne.s32.totalorder %s156_s6, %s202_s7 }
  0x17   :  { %v125_v55 = vsub.s32 %v122_v48, %v263_v1  ;;  %p207_p9 = scmp.lt.s32.totalorder %s156_s6, %s156_s6  ;;  %p208_p10 = scmp.lt.s32.totalorder %s202_s7, %s202_s7 }
  0x18   :  { %s45_s28 = sshra.s32 %s44_s27, 15  ;;  %v35_v7 = vadd.s32 %v34_v6, %v28_v2  ;;  %v36_v8 = vadd.s32 %v34_v6, %v29_v3  ;;  %v37_v9 = vadd.s32 %v34_v6, %v30_v4  ;;  %v38_v10 = vadd.s32 %v34_v6, %v31_v5  ;;  %v113_v4 = vld [vmem:[#allocation3] sm:$0xf] }
  0x19   :  { %s46_s1 = sand.u32 131071, %s45_s28  ;;  %p209_p11 = por %p208_p10, %p207_p9 }
  0x1a   :  { %s47_s29 = sxor.u32 %s46_s1, %s44_s27 }
  0x1b   :  { %s48_s30 = smul.u32 2221713035, %s47_s29  ;;  %p210_p12 = pnand %p209_p11, %p203_p8 }
  0x1d   :  { %s49_s0 = sshra.s32 %s48_s30, 16 }
  0x1e   :  { %s50_s3 = sand.u32 65535, %s49_s0 }
  0x1f   :  { %s51_s4 = sxor.u32 %s50_s3, %s48_s30 }
  0x20   :  { %v52_v11 = vstv %s51_s4 }
  0x21   :  { %v53_v12 = vxor.u32 %v52_v11, %v35_v7  ;;  %v54_v13 = vxor.u32 %v52_v11, %v36_v8  ;;  %v55_v14 = vxor.u32 %v52_v11, %v37_v9  ;;  %v56_v15 = vxor.u32 %v52_v11, %v38_v10 }
  0x23   :  { %v164_v16 = vshrl.u32 %v53_v12, 16  ;;  %v165_v17 = vshrl.u32 %v54_v13, 16  ;;  %v166_v18 = vshrl.u32 %v55_v14, 16  ;;  %v167_v19 = vshrl.u32 %v56_v15, 16 }
  0x25   :  { %v65_v20 = vxor.u32 %v164_v16, %v53_v12  ;;  %v66_v21 = vxor.u32 %v165_v17, %v54_v13  ;;  %v67_v22 = vxor.u32 %v166_v18, %v55_v14  ;;  %v68_v23 = vxor.u32 %v167_v19, %v56_v15 }
  0x27   :  { %v69_v24 = vmul.u32 2146121005, %v65_v20  ;;  %v70_v25 = vmul.u32 2146121005, %v66_v21 }
  0x28   :  { %v71_v26 = vmul.u32 2146121005, %v67_v22  ;;  %v72_v27 = vmul.u32 2146121005, %v68_v23 }
  0x29   :  { %v168_v28 = vshrl.u32 %v69_v24, 15  ;;  %v169_v29 = vshrl.u32 %v70_v25, 15 }
  0x2a   :  { %v170_v30 = vshrl.u32 %v71_v26, 15  ;;  %v171_v31 = vshrl.u32 %v72_v27, 15 }
  0x2b   :  { %v81_v32 = vxor.u32 %v168_v28, %v69_v24  ;;  %v82_v33 = vxor.u32 %v169_v29, %v70_v25 }
  0x2c   :  { %v83_v34 = vxor.u32 %v170_v30, %v71_v26  ;;  %v84_v35 = vxor.u32 %v171_v31, %v72_v27 }
  0x2d   :  { %v85_v36 = vmul.u32 2221713035, %v81_v32  ;;  %v86_v37 = vmul.u32 2221713035, %v82_v33 }
  0x2e   :  { %v87_v40 = vmul.u32 2221713035, %v83_v34  ;;  %v88_v41 = vmul.u32 2221713035, %v84_v35 }
  0x2f   :  { %v172_v42 = vshrl.u32 %v85_v36, 16  ;;  %v173_v43 = vshrl.u32 %v86_v37, 16 }
  0x30   :  { %v174_v44 = vshrl.u32 %v87_v40, 16  ;;  %v175_v45 = vshrl.u32 %v88_v41, 16 }
  0x31   :  { %v97_v46 = vxor.u32 %v172_v42, %v85_v36  ;;  %v98_v47 = vxor.u32 %v173_v43, %v86_v37 }
  0x32   :  { %v99_v49 = vxor.u32 %v174_v44, %v87_v40  ;;  %v100_v50 = vxor.u32 %v175_v45, %v88_v41 }
  0x33   :  { %v101_v51 = vand.u32 2147483647, %v97_v46  ;;  %v102_v52 = vand.u32 2147483647, %v98_v47 }
  0x34   :  { %v103_v53 = vand.u32 2147483647, %v99_v49  ;;  %v104_v54 = vand.u32 2147483647, %v100_v50 }
  0x35   :  { %vm105_vm0 = vcmp.lt.s32.totalorder %v101_v51, 1073741824  ;;  %vm106_vm1 = vcmp.lt.s32.totalorder %v102_v52, 1073741824 }
  0x36   :  { %vm107_vm2 = vcmp.lt.s32.totalorder %v103_v53, 1073741824  ;;  %vm108_vm3 = vcmp.lt.s32.totalorder %v104_v54, 1073741824  ;;  %v109_v57 = vsel %vm105_vm0, 2.0, %v230_v56  ;;  %v110_v58 = vsel %vm106_vm1, 2.0, %v230_v56 }
  0x37   :  { %v111_v59 = vsel %vm107_vm2, 2.0, %v230_v56  ;;  %v112_v60 = vsel %vm108_vm3, 2.0, %v230_v56  ;;  %v118_v61 = vcombine.low %v109_v57, %v110_v58 }
  0x38   :  { %v119_v62 = vcombine.low %v111_v59, %v112_v60 }
  0x39   :  { %v126_v63 = vrot.slane %v118_v61, %v125_v55 }
  0x3a   :  { %v133_v2 = vrot.slane %v119_v62, %v125_v55 }
  0x3c   :  { %v134_v3 = vcombine.low %v126_v63, %v133_v2 }
  0x3e   :  { %v141_v5 = vrot.slane %v134_v3, %v125_v55 }
  0x40   :  { %v143_v6 = vmul.f32 %v141_v5, %v113_v4 }
  0x42   :  { %148 = vst.msk [vmem:[#allocation6] sm:$0xf] %vm146_vm4, %v143_v6 }
  0x43   :  { %213 = shalt.err (!%p210_p12)
}
  0x44   :  { %s214_s10 = scalar_lea.hbm %s283_s2, 64 }
  0x45   :  { %p215_p13 = scmp.ne.s32.totalorder %s283_s2, %s214_s10  ;;  %p218_p0 = scmp.lt.u32.totalorder %s214_s10, %s283_s2 }
  0x47   :  { %p220_p1 = pnand %p218_p0, %p215_p13 }
  0x49   :  { %223 = shalt.err (!%p220_p1)
}
  0x4a   :  { %158 = dma.vmem_to_hbm [thread:$0]  %s156_s6, 64, %s283_s2, [#allocation5]  }
  0x4b   :  { %226 = dma.done.wait [#allocation5], 64  }
  0x4c   :  { %227 = vsyncadd [#allocation5], 4294967232 }
  0x4d   :  { %162 = vsyncpa [#allocation4], 1 }
  0x4e   :  { %163 = vsyncpa [#allocation5], 1 }

</bundles_post_ra>
